<compile_context>
chip_gen: v7x
topology: tpu7x:2x2x1
jax: 0.10.0
libtpu: 0.0.40
codegen_flags: <defaults>
</compile_context>

<pallas_src>
import jax
import jax.numpy as jnp
from jax.experimental import pallas as pl
from jax.experimental.pallas import tpu as pltpu


def _norm_affine_kernel(scale_ref, bias_ref, img_ref, out_ref):
    # scale_ref / bias_ref: (block_rows, 1) float32, one value per row
    # (= per (n, c) channel plane).  img_ref / out_ref: (block_rows, block_cols).
    x = img_ref[...].astype(jnp.float32)
    out_ref[...] = (x * scale_ref[...] + bias_ref[...]).astype(out_ref.dtype)


def _largest_aligned_divisor(dim, align, cap):
    """Largest d <= cap with d % align == 0 and d | dim; falls back to the full
    dim (which BlockSpec always allows) when dim is not align-divisible."""
    if dim % align != 0:
        return dim
    cap = max(align, min(cap, dim))
    best = None
    d = align
    while d <= cap:
        if dim % d == 0:
            best = d
        d += align
    return best if best is not None else dim


def normalization(img, mean, std, *, target_block_bytes=2 * 1024 * 1024):
    """(img - mean) / std with mean/std of shape (C,1,1) (or (C,)), img NCHW."""
    N, C, H, W = img.shape
    mean = jnp.asarray(mean, dtype=jnp.float32).reshape(-1)
    std = jnp.asarray(std, dtype=jnp.float32).reshape(-1)
    assert mean.shape == (C,) and std.shape == (C,)

    # Fold the normalization into a single affine (computed once, full f32).
    scale_c = 1.0 / std          # (C,)
    bias_c = -mean * scale_c     # (C,)

    # Lane-dense flattened view: row r = n*C + c is one channel plane.
    R = N * C
    S = H * W
    img2 = img.reshape(R, S)
    scale_rows = jnp.tile(scale_c, N).reshape(R, 1)   # per-row scale
    bias_rows = jnp.tile(bias_c, N).reshape(R, 1)     # per-row bias

    # Tile sizing: last dim a multiple of 128 (lane-dense stores), second-to-
    # last a multiple of the dtype's sublane packing, total block <= ~2 MiB.
    itemsize = jnp.dtype(img.dtype).itemsize
    sublane = 8 * max(1, 4 // itemsize)               # 8 f32, 16 bf16, 32 int8
    block_cols = _largest_aligned_divisor(S, 128, 4096)
    rows_cap = max(sublane, target_block_bytes // max(1, block_cols * itemsize))
    block_rows = _largest_aligned_divisor(R, sublane, rows_cap)

    grid = (R // block_rows, S // block_cols)

    out2 = pl.pallas_call(
        _norm_affine_kernel,
        out_shape=jax.ShapeDtypeStruct((R, S), img.dtype),
        grid_spec=pltpu.PrefetchScalarGridSpec(
            num_scalar_prefetch=0,
            grid=grid,
            in_specs=[
                pl.BlockSpec((block_rows, 1), lambda i, j: (i, 0)),            # scale
                pl.BlockSpec((block_rows, 1), lambda i, j: (i, 0)),            # bias
                pl.BlockSpec((block_rows, block_cols), lambda i, j: (i, j)),   # img
            ],
            out_specs=pl.BlockSpec((block_rows, block_cols), lambda i, j: (i, j)),
        ),
        compiler_params=pltpu.CompilerParams(
            dimension_semantics=("parallel", "parallel"),
            vmem_limit_bytes=32 * 1024 * 1024,
        ),
    )(scale_rows, bias_rows, img2)

    return out2.reshape(N, C, H, W)


if __name__ == "__main__":
    # Classic style-transfer / ImageNet stats, shaped (C,1,1) exactly like the
    # PyTorch module's .view(-1, 1, 1).
    mean = jnp.asarray([0.485, 0.456, 0.406], dtype=jnp.float32).reshape(-1, 1, 1)
    std = jnp.asarray([0.229, 0.224, 0.225], dtype=jnp.float32).reshape(-1, 1, 1)

    # Deterministic example input, NCHW.
    key = jax.random.PRNGKey(0)
    img = jax.random.uniform(key, (2, 3, 16, 16), dtype=jnp.float32)

    out = jax.block_until_ready(normalization(img, mean, std))

    # Plain-JAX reference of the PyTorch semantics (exact divide).  The kernel
    # uses precomputed 1/std and -mean/std, so allow a few-ULP deviation.
    ref = (img - mean[None]) / std[None]
    assert out.shape == img.shape and out.dtype == img.dtype
    assert jnp.allclose(out, ref, atol=1e-5, rtol=1e-5)

    print("KERNEL_OK")
</pallas_src>

<mosaic_0001>
module attributes {stable_mosaic.version = 11 : i64} {
  func.func @_norm_affine_kernel(%arg0: i32, %arg1: i32, %arg2: memref<6x1xf32, #tpu.memory_space<vmem>>, %arg3: memref<6x1xf32, #tpu.memory_space<vmem>>, %arg4: memref<6x256xf32, #tpu.memory_space<vmem>>, %arg5: memref<6x256xf32, #tpu.memory_space<vmem>>) attributes {dimension_semantics = [#tpu.dimension_semantics<parallel>, #tpu.dimension_semantics<parallel>], iteration_bounds = array<i64: 1, 1>, scalar_prefetch = 0 : i64, scratch_operands = 0 : i64, tpu.core_type = #tpu.core_type<tc>, window_params = [{transform_indices = @transform_0, window_bounds = array<i64: 6, 1>}, {transform_indices = @transform_1, window_bounds = array<i64: 6, 1>}, {transform_indices = @transform_2, window_bounds = array<i64: 6, 256>}, {transform_indices = @transform_3, window_bounds = array<i64: 6, 256>}]} {
    %c0 = arith.constant 0 : index
    %c0_0 = arith.constant 0 : index
    %0 = vector.load %arg4[%c0, %c0_0] : memref<6x256xf32, #tpu.memory_space<vmem>>, vector<6x256xf32>
    %c0_1 = arith.constant 0 : index
    %c0_2 = arith.constant 0 : index
    %1 = vector.load %arg2[%c0_1, %c0_2] : memref<6x1xf32, #tpu.memory_space<vmem>>, vector<6x1xf32>
    %2 = vector.broadcast %1 : vector<6x1xf32> to vector<6x256xf32>
    %3 = arith.mulf %0, %2 : vector<6x256xf32>
    %c0_3 = arith.constant 0 : index
    %c0_4 = arith.constant 0 : index
    %4 = vector.load %arg3[%c0_3, %c0_4] : memref<6x1xf32, #tpu.memory_space<vmem>>, vector<6x1xf32>
    %5 = vector.broadcast %4 : vector<6x1xf32> to vector<6x256xf32>
    %6 = arith.addf %3, %5 : vector<6x256xf32>
    %c0_5 = arith.constant 0 : index
    %c0_6 = arith.constant 0 : index
    %7 = vector.load %arg5[%c0_5, %c0_6] : memref<6x256xf32, #tpu.memory_space<vmem>>, vector<6x256xf32>
    tpu.vector_store %arg5[%c0_5, %c0_6], %6 {strides = array<i32>} : memref<6x256xf32, #tpu.memory_space<vmem>>, vector<6x256xf32>,
    return
  }
  func.func @transform_0(%arg0: i32, %arg1: i32) -> (i32, i32) {
    %c0_i32 = arith.constant 0 : i32
    %c0_i32_0 = arith.constant 0 : i32
    return %arg0, %c0_i32 : i32, i32
  }
  func.func @transform_1(%arg0: i32, %arg1: i32) -> (i32, i32) {
    %c0_i32 = arith.constant 0 : i32
    %c0_i32_0 = arith.constant 0 : i32
    return %arg0, %c0_i32 : i32, i32
  }
  func.func @transform_2(%arg0: i32, %arg1: i32) -> (i32, i32) {
    %c0_i32 = arith.constant 0 : i32
    return %arg0, %arg1 : i32, i32
  }
  func.func @transform_3(%arg0: i32, %arg1: i32) -> (i32, i32) {
    %c0_i32 = arith.constant 0 : i32
    return %arg0, %arg1 : i32, i32
  }
}

</mosaic_0001>

<bundles_post_ra>
// kernel: tpu_custom_call.1
= control target key start
LH: loop header
LB: loop body
LE: loop exit
PB: predicated region body
PF: predicated region fallthrough
CT: control target
= control target key end

     0   :  { %v76_v1 = vmov 0   ;;  %s122_s0 = inlined_call_operand.vmem [shape: f32[6,1], index: 0, kind: input, shape index: {}]   ;;  %s123_s1 = inlined_call_operand.vmem [shape: f32[6,1], index: 1, kind: input, shape index: {}]   ;;  %s124_s2 = inlined_call_operand.vmem [shape: f32[6,256], index: 2, kind: input, shape index: {}]   ;;  %s125_s3 = inlined_call_operand.hbm [shape: f32[6,256], index: 3, kind: output, shape index: {}]  }
   0x1   :  { %v17_v0 = vld [vmem:[%s122_s0] sm:$0x3f]  ;;  %51 = vset.pattern.permute.xlu0 %v76_v1 }
   0x2   :  { %8 = vsyncpa [#allocation3], 0  ;;  %20 = vperm.xlu0 %51, %v17_v0   ;;  %v25_v2 = vld [vmem:[%s123_s1] sm:$0x3f]  ;;  %v16_v5 = vld [vmem:[%s124_s2 + $0x8] sm:$0x3f] }
   0x3   :  { %v15_v4 = vld [vmem:[%s124_s2] sm:$0x3f]  ;;  %s77_s20 = smov [#allocation2]  }
   0x4   :  { %s41_s0 = sshll.u32 %s77_s20, 4  ;;  %s42_s0 = int_to_ptr.vmem [resolvable:$true] %s41_s0 }
   0x5   :  { %s52_s1 = scalar_lea.vmem %s42_s0, 256  ;;  %p57_p1 = scmp.lt.s32.totalorder %s42_s0, %s42_s0 }
   0x6   :  { %28 = vperm.xlu0 %51, %v25_v2   ;;  %p53_p0 = scmp.ne.s32.totalorder %s42_s0, %s52_s1  ;;  %p58_p2 = scmp.lt.s32.totalorder %s52_s1, %s52_s1 }
   0x8   :  { %p59_p3 = por %p58_p2, %p57_p1 }
   0xa   :  { %p60_p4 = pnand %p59_p3, %p53_p0 }
  0x81   :  { %v21_v3 = vpop.permute.xlu0 %20 }
  0x82   :  { %v23_v6 = vmul.f32 %v21_v3, %v15_v4  ;;  %v24_v7 = vmul.f32 %v21_v3, %v16_v5 }
  0x85   :  { %v29_v8 = vpop.permute.xlu0 %28 }
  0x86   :  { %v31_v9 = vadd.f32 %v29_v8, %v23_v6  ;;  %v32_v10 = vadd.f32 %v29_v8, %v24_v7 }
  0x88   :  { %33 = vst [vmem:[#allocation2] sm:$0x3f] %v31_v9  ;;  %34 = vst [vmem:[#allocation2 + $0x8] sm:$0x3f] %v32_v10 }
  0x89   :  { %63 = shalt.err (!%p60_p4)
}
  0x8a   :  { %s64_s2 = scalar_lea.hbm %s125_s3, 256 }
  0x8b   :  { %p65_p5 = scmp.ne.s32.totalorder %s125_s3, %s64_s2  ;;  %p68_p6 = scmp.lt.u32.totalorder %s64_s2, %s125_s3 }
  0x8d   :  { %p70_p7 = pnand %p68_p6, %p65_p5 }
  0x8f   :  { %73 = shalt.err (!%p70_p7)
}
  0x90   :  { %44 = dma.vmem_to_hbm [thread:$0]  %s42_s0, 256, %s125_s3, [#allocation3]  }
  0x91   :  { %74 = dma.done.wait [#allocation3], 256  }
  0x92   :  { %75 = vsyncadd [#allocation3], 4294967040 }
  0x93   :  { %48 = vsyncpa [#allocation3], 1 }

</bundles_post_ra>
